<compile_context>
chip_gen: v7x
topology: tpu7x:2x2x1
jax: 0.10.0
libtpu: 0.0.40
codegen_flags: <defaults>
</compile_context>

<pallas_src>
import functools
import math

import jax
import jax.numpy as jnp
from jax.experimental import pallas as pl
from jax.experimental.pallas import tpu as pltpu


# ---------------------------------- kernel ----------------------------------

def self_attention_kernel(q_ref, k_ref, v_ref, madd_ref,
                          wq_ref, wk_ref, wv_ref, wo_ref, bo_ref,
                          out_ref, *, num_heads):
    h = num_heads
    lq, e = q_ref.shape[1], q_ref.shape[2]
    lk = k_ref.shape[1]
    bf16 = jnp.bfloat16

    # Broadcast the per-batch activations over the head axis so every matmul is
    # a head-batched dot_general (no per-head lane slicing, no transposes).
    xq = jnp.broadcast_to(q_ref[0][None], (h, lq, e)).astype(bf16)
    xk = jnp.broadcast_to(k_ref[0][None], (h, lk, e)).astype(bf16)
    xv = jnp.broadcast_to(v_ref[0][None], (h, lk, e)).astype(bf16)

    # Head-batched Q/K/V projections; contraction over E (lane dim of both
    # operands), bf16 operands with f32 accumulation.  The 1/sqrt(E) softmax
    # scale is already folded into wq host-side.
    q = jnp.einsum('hqe,hde->hqd', xq, wq_ref[...],
                   preferred_element_type=jnp.float32)
    k = jnp.einsum('hke,hde->hkd', xk, wk_ref[...],
                   preferred_element_type=jnp.float32)
    v = jnp.einsum('hke,hde->hkd', xv, wv_ref[...],
                   preferred_element_type=jnp.float32)

    # Scores + additive mask + softmax, all in f32.
    s = jnp.einsum('hqd,hkd->hqk', q.astype(bf16), k.astype(bf16),
                   preferred_element_type=jnp.float32)
    s = s + madd_ref[0][None]          # (H, Lq, Lk); additive 0 / -1e20 mask
    m = jnp.max(s, axis=-1, keepdims=True)
    p = jnp.exp(s - m)
    a = p * pl.reciprocal(jnp.sum(p, axis=-1, keepdims=True), approx=True)

    # Attention-weighted values, then the per-head slice of fc_out; summing the
    # per-head contributions replaces the lane-dim concat of the reference.
    o = jnp.einsum('hqk,hkd->hqd', a.astype(bf16), v.astype(bf16),
                   preferred_element_type=jnp.float32)
    proj = jnp.einsum('hqd,hde->hqe', o.astype(bf16), wo_ref[...],
                      preferred_element_type=jnp.float32)
    out_ref[0] = jnp.sum(proj, axis=0) + bo_ref[...]


# ------------------------------- wrapper glue --------------------------------

def self_attention(params, queries, keys, values, mask=None, *, num_heads):
    n, lq, e = queries.shape
    lk = keys.shape[1]
    assert values.shape[1] == lk, "keys/values must share sequence length"
    dh = e // num_heads
    assert dh * num_heads == e

    inv_scale = 1.0 / math.sqrt(e)

    # Head-major bf16 weights, prepared once host-side (grid-invariant):
    #   wq/wk/wv rows [h*dh:(h+1)*dh] produce head h  ->  (H, dh, E).
    def head_major(w):                    # (E_out, E_in) -> (H, dh, E_in)
        return w.reshape(num_heads, dh, e).astype(jnp.bfloat16)

    # Fold the 1/sqrt(embed_size) scale into wq (in f32 before the bf16 cast)
    # so the kernel has no in-loop scaling op at all.
    wq = head_major(params['wq'].astype(jnp.float32) * inv_scale)
    wk = head_major(params['wk'])
    wv = head_major(params['wv'])
    # fc_out consumes the head-concatenated features: pre-transpose so head h
    # reads its input columns [h*dh:(h+1)*dh]; kernel never does `.T`.
    wo = params['wo'].T.reshape(num_heads, dh, e).astype(jnp.bfloat16)
    bo = params['bo'].reshape(1, e).astype(jnp.float32)

    # Additive mask (0 keep / -1e20 masked), precomputed in the wrapper so the
    # kernel does a single f32 add instead of a compare+select per head.
    if mask is None:
        mask_add = jnp.zeros((n, lq, lk), jnp.float32)
    else:
        mask_add = jnp.where(jnp.broadcast_to(mask, (n, lq, lk)) == 0,
                             jnp.float32(-1e20), jnp.float32(0.0))

    kernel = functools.partial(self_attention_kernel, num_heads=num_heads)
    return pl.pallas_call(
        kernel,
        out_shape=jax.ShapeDtypeStruct((n, lq, e), jnp.float32),
        grid=(n,),
        in_specs=[
            pl.BlockSpec((1, lq, e), lambda i: (i, 0, 0)),          # queries
            pl.BlockSpec((1, lk, e), lambda i: (i, 0, 0)),          # keys
            pl.BlockSpec((1, lk, e), lambda i: (i, 0, 0)),          # values
            pl.BlockSpec((1, lq, lk), lambda i: (i, 0, 0)),         # additive mask
            pl.BlockSpec((num_heads, dh, e), lambda i: (0, 0, 0)),  # wq (grid-invariant)
            pl.BlockSpec((num_heads, dh, e), lambda i: (0, 0, 0)),  # wk
            pl.BlockSpec((num_heads, dh, e), lambda i: (0, 0, 0)),  # wv
            pl.BlockSpec((num_heads, dh, e), lambda i: (0, 0, 0)),  # wo
            pl.BlockSpec((1, e), lambda i: (0, 0)),                 # bo
        ],
        out_specs=pl.BlockSpec((1, lq, e), lambda i: (i, 0, 0)),
        # Batch iterations are independent -> "parallel" lets v7x shard the
        # grid across both TensorCores (no-op on single-TC v5e/v6e).
        compiler_params=pltpu.CompilerParams(dimension_semantics=("parallel",)),
    )(queries.astype(jnp.float32), keys.astype(jnp.float32),
      values.astype(jnp.float32), mask_add, wq, wk, wv, wo, bo)


# --------------------------- pure-JAX reference -------------------------------

def self_attention_reference(params, queries, keys, values, mask, num_heads):
    n, lq, e = queries.shape
    dh = e // num_heads
    q = (queries @ params['wq'].T).reshape(n, lq, num_heads, dh)
    k = (keys @ params['wk'].T).reshape(n, -1, num_heads, dh)
    v = (values @ params['wv'].T).reshape(n, -1, num_heads, dh)
    s = jnp.einsum('nqhd,nkhd->nhqk', q, k)
    if mask is not None:
        s = jnp.where(mask[:, None, :, :] == 0, jnp.float32(-1e20), s)
    a = jax.nn.softmax(s / (e ** 0.5), axis=-1)
    o = jnp.einsum('nhqk,nkhd->nqhd', a, v).reshape(n, lq, e)
    return o @ params['wo'].T + params['bo']


# ------------------------------------ main ------------------------------------

if __name__ == "__main__":
    N, S, E, H = 2, 8, 32, 4

    key = jax.random.PRNGKey(0)
    kq, kk, kv, kwq, kwk, kwv, kwo, kbo = jax.random.split(key, 8)

    queries = jax.random.normal(kq, (N, S, E), jnp.float32)
    keys = jax.random.normal(kk, (N, S, E), jnp.float32)
    values = jax.random.normal(kv, (N, S, E), jnp.float32)

    params = {
        'wq': 0.02 * jax.random.normal(kwq, (E, E), jnp.float32),  # (out, in), no bias
        'wk': 0.02 * jax.random.normal(kwk, (E, E), jnp.float32),
        'wv': 0.02 * jax.random.normal(kwv, (E, E), jnp.float32),
        'wo': 0.02 * jax.random.normal(kwo, (E, E), jnp.float32),  # fc_out weight
        'bo': 0.02 * jax.random.normal(kbo, (E,), jnp.float32),    # fc_out bias
    }

    # Causal mask: 1.0 = keep, 0.0 = masked.
    mask = jnp.broadcast_to(jnp.tril(jnp.ones((S, S), jnp.float32)), (N, S, S))

    out = self_attention(params, queries, keys, values, mask, num_heads=H)
    out = jax.block_until_ready(out)
    assert out.shape == (N, S, E) and out.dtype == jnp.float32

    # Parity check vs. the PyTorch-equivalent pure-JAX reference (bf16 matmuls
    # in the kernel -> loose absolute tolerance).
    ref = self_attention_reference(params, queries, keys, values, mask, H)
    err = float(jnp.max(jnp.abs(out - ref)))
    assert err < 5e-3, f"kernel/reference mismatch: max abs err = {err}"

    print("KERNEL_OK")
</pallas_src>

<mosaic_0001>
module attributes {stable_mosaic.version = 11 : i64} {
  func.func @self_attention_kernel(%arg0: i32, %arg1: memref<1x8x32xf32, #tpu.memory_space<vmem>>, %arg2: memref<1x8x32xf32, #tpu.memory_space<vmem>>, %arg3: memref<1x8x32xf32, #tpu.memory_space<vmem>>, %arg4: memref<1x8x8xf32, #tpu.memory_space<vmem>>, %arg5: memref<4x8x32xbf16, #tpu.memory_space<vmem>>, %arg6: memref<4x8x32xbf16, #tpu.memory_space<vmem>>, %arg7: memref<4x8x32xbf16, #tpu.memory_space<vmem>>, %arg8: memref<4x8x32xbf16, #tpu.memory_space<vmem>>, %arg9: memref<1x32xf32, #tpu.memory_space<vmem>>, %arg10: memref<1x8x32xf32, #tpu.memory_space<vmem>>) attributes {dimension_semantics = [#tpu.dimension_semantics<parallel>], iteration_bounds = array<i64: 2>, scalar_prefetch = 0 : i64, scratch_operands = 0 : i64, tpu.core_type = #tpu.core_type<tc>, window_params = [{transform_indices = @transform_0, window_bounds = array<i64: 1, 8, 32>}, {transform_indices = @transform_1, window_bounds = array<i64: 1, 8, 32>}, {transform_indices = @transform_2, window_bounds = array<i64: 1, 8, 32>}, {transform_indices = @transform_3, window_bounds = array<i64: 1, 8, 8>}, {pipeline_mode = #tpu.pipeline_mode<synchronous>, transform_indices = @transform_4, window_bounds = array<i64: 4, 8, 32>}, {pipeline_mode = #tpu.pipeline_mode<synchronous>, transform_indices = @transform_5, window_bounds = array<i64: 4, 8, 32>}, {pipeline_mode = #tpu.pipeline_mode<synchronous>, transform_indices = @transform_6, window_bounds = array<i64: 4, 8, 32>}, {pipeline_mode = #tpu.pipeline_mode<synchronous>, transform_indices = @transform_7, window_bounds = array<i64: 4, 8, 32>}, {pipeline_mode = #tpu.pipeline_mode<synchronous>, transform_indices = @transform_8, window_bounds = array<i64: 1, 32>}, {transform_indices = @transform_9, window_bounds = array<i64: 1, 8, 32>}]} {
    %c0 = arith.constant 0 : index
    %c0_0 = arith.constant 0 : index
    %c0_1 = arith.constant 0 : index
    %0 = vector.load %arg1[%c0, %c0_0, %c0_1] : memref<1x8x32xf32, #tpu.memory_space<vmem>>, vector<1x8x32xf32>
    %1 = vector.shape_cast %0 : vector<1x8x32xf32> to vector<8x32xf32>
    %2 = vector.shape_cast %1 : vector<8x32xf32> to vector<1x8x32xf32>
    %3 = vector.shape_cast %2 : vector<1x8x32xf32> to vector<1x8x32xf32>
    %4 = vector.broadcast %3 : vector<1x8x32xf32> to vector<4x8x32xf32>
    %5 = arith.truncf %4 : vector<4x8x32xf32> to vector<4x8x32xbf16>
    %c0_2 = arith.constant 0 : index
    %c0_3 = arith.constant 0 : index
    %c0_4 = arith.constant 0 : index
    %6 = vector.load %arg2[%c0_2, %c0_3, %c0_4] : memref<1x8x32xf32, #tpu.memory_space<vmem>>, vector<1x8x32xf32>
    %7 = vector.shape_cast %6 : vector<1x8x32xf32> to vector<8x32xf32>
    %8 = vector.shape_cast %7 : vector<8x32xf32> to vector<1x8x32xf32>
    %9 = vector.shape_cast %8 : vector<1x8x32xf32> to vector<1x8x32xf32>
    %10 = vector.broadcast %9 : vector<1x8x32xf32> to vector<4x8x32xf32>
    %11 = arith.truncf %10 : vector<4x8x32xf32> to vector<4x8x32xbf16>
    %c0_5 = arith.constant 0 : index
    %c0_6 = arith.constant 0 : index
    %c0_7 = arith.constant 0 : index
    %12 = vector.load %arg3[%c0_5, %c0_6, %c0_7] : memref<1x8x32xf32, #tpu.memory_space<vmem>>, vector<1x8x32xf32>
    %13 = vector.shape_cast %12 : vector<1x8x32xf32> to vector<8x32xf32>
    %14 = vector.shape_cast %13 : vector<8x32xf32> to vector<1x8x32xf32>
    %15 = vector.shape_cast %14 : vector<1x8x32xf32> to vector<1x8x32xf32>
    %16 = vector.broadcast %15 : vector<1x8x32xf32> to vector<4x8x32xf32>
    %17 = arith.truncf %16 : vector<4x8x32xf32> to vector<4x8x32xbf16>
    %c0_8 = arith.constant 0 : index
    %c0_9 = arith.constant 0 : index
    %c0_10 = arith.constant 0 : index
    %18 = vector.load %arg5[%c0_8, %c0_9, %c0_10] : memref<4x8x32xbf16, #tpu.memory_space<vmem>>, vector<4x8x32xbf16>
    "tpu.trace_start"() <{level = 10 : i32, message = "hqe,hde->hqd"}> : () -> ()
    %cst = arith.constant dense<0.000000e+00> : vector<4x8x8xf32>
    %19 = tpu.matmul %5, %18, %cst {dimension_numbers = #tpu.dot_dimension_numbers<[2], [2], [1], [1], [0, 0, 0, 1, 1, 1], [0], [0]>} : vector<4x8x32xbf16>, vector<4x8x32xbf16>, vector<4x8x8xf32> -> vector<4x8x8xf32>
    "tpu.trace_stop"() : () -> ()
    %c0_11 = arith.constant 0 : index
    %c0_12 = arith.constant 0 : index
    %c0_13 = arith.constant 0 : index
    %20 = vector.load %arg6[%c0_11, %c0_12, %c0_13] : memref<4x8x32xbf16, #tpu.memory_space<vmem>>, vector<4x8x32xbf16>
    "tpu.trace_start"() <{level = 10 : i32, message = "hke,hde->hkd"}> : () -> ()
    %cst_14 = arith.constant dense<0.000000e+00> : vector<4x8x8xf32>
    %21 = tpu.matmul %11, %20, %cst_14 {dimension_numbers = #tpu.dot_dimension_numbers<[2], [2], [1], [1], [0, 0, 0, 1, 1, 1], [0], [0]>} : vector<4x8x32xbf16>, vector<4x8x32xbf16>, vector<4x8x8xf32> -> vector<4x8x8xf32>
    "tpu.trace_stop"() : () -> ()
    %c0_15 = arith.constant 0 : index
    %c0_16 = arith.constant 0 : index
    %c0_17 = arith.constant 0 : index
    %22 = vector.load %arg7[%c0_15, %c0_16, %c0_17] : memref<4x8x32xbf16, #tpu.memory_space<vmem>>, vector<4x8x32xbf16>
    "tpu.trace_start"() <{level = 10 : i32, message = "hke,hde->hkd"}> : () -> ()
    %cst_18 = arith.constant dense<0.000000e+00> : vector<4x8x8xf32>
    %23 = tpu.matmul %17, %22, %cst_18 {dimension_numbers = #tpu.dot_dimension_numbers<[2], [2], [1], [1], [0, 0, 0, 1, 1, 1], [0], [0]>} : vector<4x8x32xbf16>, vector<4x8x32xbf16>, vector<4x8x8xf32> -> vector<4x8x8xf32>
    "tpu.trace_stop"() : () -> ()
    %24 = arith.truncf %19 : vector<4x8x8xf32> to vector<4x8x8xbf16>
    %25 = arith.truncf %21 : vector<4x8x8xf32> to vector<4x8x8xbf16>
    "tpu.trace_start"() <{level = 10 : i32, message = "hqd,hkd->hqk"}> : () -> ()
    %cst_19 = arith.constant dense<0.000000e+00> : vector<4x8x8xf32>
    %26 = tpu.matmul %24, %25, %cst_19 {dimension_numbers = #tpu.dot_dimension_numbers<[2], [2], [1], [1], [0, 0, 0, 1, 1, 1], [0], [0]>} : vector<4x8x8xbf16>, vector<4x8x8xbf16>, vector<4x8x8xf32> -> vector<4x8x8xf32>
    "tpu.trace_stop"() : () -> ()
    %c0_20 = arith.constant 0 : index
    %c0_21 = arith.constant 0 : index
    %c0_22 = arith.constant 0 : index
    %27 = vector.load %arg4[%c0_20, %c0_21, %c0_22] : memref<1x8x8xf32, #tpu.memory_space<vmem>>, vector<1x8x8xf32>
    %28 = vector.shape_cast %27 : vector<1x8x8xf32> to vector<8x8xf32>
    %29 = vector.shape_cast %28 : vector<8x8xf32> to vector<1x8x8xf32>
    %30 = vector.broadcast %29 : vector<1x8x8xf32> to vector<4x8x8xf32>
    %31 = arith.addf %26, %30 : vector<4x8x8xf32>
    %cst_23 = arith.constant dense<0xFF800000> : vector<4x8xf32>
    %32 = vector.multi_reduction <maximumf>, %31, %cst_23 [2] : vector<4x8x8xf32> to vector<4x8xf32>
    %33 = vector.shape_cast %32 : vector<4x8xf32> to vector<4x8x1xf32>
    %34 = vector.broadcast %33 : vector<4x8x1xf32> to vector<4x8x8xf32>
    %35 = arith.subf %31, %34 : vector<4x8x8xf32>
    %36 = math.exp %35 : vector<4x8x8xf32>
    %cst_24 = arith.constant dense<0.000000e+00> : vector<4x8xf32>
    %37 = vector.multi_reduction <add>, %36, %cst_24 [2] : vector<4x8x8xf32> to vector<4x8xf32>
    %38 = vector.shape_cast %37 : vector<4x8xf32> to vector<4x8x1xf32>
    %39 = tpu.reciprocal %38 {approx = true} : vector<4x8x1xf32> -> vector<4x8x1xf32>
    %40 = vector.broadcast %39 : vector<4x8x1xf32> to vector<4x8x8xf32>
    %41 = arith.mulf %36, %40 : vector<4x8x8xf32>
    %42 = arith.truncf %41 : vector<4x8x8xf32> to vector<4x8x8xbf16>
    %43 = arith.truncf %23 : vector<4x8x8xf32> to vector<4x8x8xbf16>
    "tpu.trace_start"() <{level = 10 : i32, message = "hqk,hkd->hqd"}> : () -> ()
    %cst_25 = arith.constant dense<0.000000e+00> : vector<4x8x8xf32>
    %44 = tpu.matmul %42, %43, %cst_25 {dimension_numbers = #tpu.dot_dimension_numbers<[2], [1], [1], [2], [0, 0, 0, 1, 1, 2], [0], [0]>} : vector<4x8x8xbf16>, vector<4x8x8xbf16>, vector<4x8x8xf32> -> vector<4x8x8xf32>
    "tpu.trace_stop"() : () -> ()
    %45 = arith.truncf %44 : vector<4x8x8xf32> to vector<4x8x8xbf16>
    %c0_26 = arith.constant 0 : index
    %c0_27 = arith.constant 0 : index
    %c0_28 = arith.constant 0 : index
    %46 = vector.load %arg8[%c0_26, %c0_27, %c0_28] : memref<4x8x32xbf16, #tpu.memory_space<vmem>>, vector<4x8x32xbf16>
    "tpu.trace_start"() <{level = 10 : i32, message = "hqd,hde->hqe"}> : () -> ()
    %cst_29 = arith.constant dense<0.000000e+00> : vector<4x8x32xf32>
    %47 = tpu.matmul %45, %46, %cst_29 {dimension_numbers = #tpu.dot_dimension_numbers<[2], [1], [1], [2], [0, 0, 0, 1, 1, 2], [0], [0]>} : vector<4x8x8xbf16>, vector<4x8x32xbf16>, vector<4x8x32xf32> -> vector<4x8x32xf32>
    "tpu.trace_stop"() : () -> ()
    %cst_30 = arith.constant dense<0.000000e+00> : vector<8x32xf32>
    %48 = vector.multi_reduction <add>, %47, %cst_30 [0] : vector<4x8x32xf32> to vector<8x32xf32>
    %c0_31 = arith.constant 0 : index
    %c0_32 = arith.constant 0 : index
    %49 = vector.load %arg9[%c0_31, %c0_32] : memref<1x32xf32, #tpu.memory_space<vmem>>, vector<1x32xf32>
    %50 = vector.broadcast %49 : vector<1x32xf32> to vector<8x32xf32>
    %51 = arith.addf %48, %50 : vector<8x32xf32>
    %c0_33 = arith.constant 0 : index
    %c0_34 = arith.constant 0 : index
    %c0_35 = arith.constant 0 : index
    %52 = vector.load %arg10[%c0_33, %c0_34, %c0_35] : memref<1x8x32xf32, #tpu.memory_space<vmem>>, vector<1x8x32xf32>
    %53 = vector.shape_cast %52 : vector<1x8x32xf32> to vector<8x32xf32>
    %54 = vector.shape_cast %51 : vector<8x32xf32> to vector<1x8x32xf32>
    tpu.vector_store %arg10[%c0_33, %c0_34, %c0_35], %54 {strides = array<i32>} : memref<1x8x32xf32, #tpu.memory_space<vmem>>, vector<1x8x32xf32>,
    return
  }
  func.func @transform_0(%arg0: i32) -> (i32, i32, i32) {
    %c0_i32 = arith.constant 0 : i32
    %c0_i32_0 = arith.constant 0 : i32
    %c0_i32_1 = arith.constant 0 : i32
    return %arg0, %c0_i32, %c0_i32_0 : i32, i32, i32
  }
  func.func @transform_1(%arg0: i32) -> (i32, i32, i32) {
    %c0_i32 = arith.constant 0 : i32
    %c0_i32_0 = arith.constant 0 : i32
    %c0_i32_1 = arith.constant 0 : i32
    return %arg0, %c0_i32, %c0_i32_0 : i32, i32, i32
  }
  func.func @transform_2(%arg0: i32) -> (i32, i32, i32) {
    %c0_i32 = arith.constant 0 : i32
    %c0_i32_0 = arith.constant 0 : i32
    %c0_i32_1 = arith.constant 0 : i32
    return %arg0, %c0_i32, %c0_i32_0 : i32, i32, i32
  }
  func.func @transform_3(%arg0: i32) -> (i32, i32, i32) {
    %c0_i32 = arith.constant 0 : i32
    %c0_i32_0 = arith.constant 0 : i32
    %c0_i32_1 = arith.constant 0 : i32
    return %arg0, %c0_i32, %c0_i32_0 : i32, i32, i32
  }
  func.func @transform_4(%arg0: i32) -> (i32, i32, i32) {
    %c0_i32 = arith.constant 0 : i32
    %c0_i32_0 = arith.constant 0 : i32
    %c0_i32_1 = arith.constant 0 : i32
    %c0_i32_2 = arith.constant 0 : i32
    return %c0_i32, %c0_i32_0, %c0_i32_1 : i32, i32, i32
  }
  func.func @transform_5(%arg0: i32) -> (i32, i32, i32) {
    %c0_i32 = arith.constant 0 : i32
    %c0_i32_0 = arith.constant 0 : i32
    %c0_i32_1 = arith.constant 0 : i32
    %c0_i32_2 = arith.constant 0 : i32
    return %c0_i32, %c0_i32_0, %c0_i32_1 : i32, i32, i32
  }
  func.func @transform_6(%arg0: i32) -> (i32, i32, i32) {
    %c0_i32 = arith.constant 0 : i32
    %c0_i32_0 = arith.constant 0 : i32
    %c0_i32_1 = arith.constant 0 : i32
    %c0_i32_2 = arith.constant 0 : i32
    return %c0_i32, %c0_i32_0, %c0_i32_1 : i32, i32, i32
  }
  func.func @transform_7(%arg0: i32) -> (i32, i32, i32) {
    %c0_i32 = arith.constant 0 : i32
    %c0_i32_0 = arith.constant 0 : i32
    %c0_i32_1 = arith.constant 0 : i32
    %c0_i32_2 = arith.constant 0 : i32
    return %c0_i32, %c0_i32_0, %c0_i32_1 : i32, i32, i32
  }
  func.func @transform_8(%arg0: i32) -> (i32, i32) {
    %c0_i32 = arith.constant 0 : i32
    %c0_i32_0 = arith.constant 0 : i32
    %c0_i32_1 = arith.constant 0 : i32
    return %c0_i32, %c0_i32_0 : i32, i32
  }
  func.func @transform_9(%arg0: i32) -> (i32, i32, i32) {
    %c0_i32 = arith.constant 0 : i32
    %c0_i32_0 = arith.constant 0 : i32
    %c0_i32_1 = arith.constant 0 : i32
    return %arg0, %c0_i32, %c0_i32_0 : i32, i32, i32
  }
}

</mosaic_0001>

<bundles_post_ra>
// kernel: tpu_custom_call.1
= control target key start
LH: loop header
LB: loop body
LE: loop exit
PB: predicated region body
PF: predicated region fallthrough
CT: control target
= control target key end

     0   :  { %s3098_s0 = inlined_call_operand.hbm [shape: f32[2,8,32], index: 0, kind: input, shape index: {}]   ;;  %s3099_s1 = inlined_call_operand.hbm [shape: f32[2,8,32], index: 1, kind: input, shape index: {}]   ;;  %s3100_s2 = inlined_call_operand.hbm [shape: f32[2,8,32], index: 2, kind: input, shape index: {}]   ;;  %s3101_s3 = inlined_call_operand.hbm [shape: f32[2,8,8], index: 3, kind: input, shape index: {}]   ;;  %s3102_s4 = inlined_call_operand.hbm [shape: bf16[4,8,32], index: 4, kind: input, shape index: {}]   ;;  %s3103_s5 = inlined_call_operand.vmem [shape: bf16[4,8,32], index: 5, kind: input, shape index: {}]   ;;  %s3104_s6 = inlined_call_operand.hbm [shape: bf16[4,8,32], index: 6, kind: input, shape index: {}]   ;;  %s3105_s7 = inlined_call_operand.hbm [shape: bf16[4,8,32], index: 7, kind: input, shape index: {}]   ;;  %s3106_s8 = inlined_call_operand.vmem [shape: f32[1,32], index: 8, kind: input, shape index: {}]   ;;  %s3107_s9 = inlined_call_operand.hbm [shape: f32[2,8,32], index: 9, kind: output, shape index: {}]  }
   0x1   :  { %3126 = sst [smem:[#allocation25_spill]] %s3099_s1 }
   0x2   :  { %3127 = sst [smem:[#allocation26_spill]] %s3102_s4 }
   0x3   :  { %3128 = sst [smem:[#allocation27_spill]] %s3104_s6 }
   0x4   :  { %3129 = sst [smem:[#allocation28_spill]] %s3107_s9 }
   0x5   :  { %14 = vsyncpa [#allocation3], 0 }
   0x6   :  { %16 = vsyncpa [#allocation3 + $0x1], 0 }
   0x7   :  { %17 = vsyncpa [#allocation6], 0 }
   0x8   :  { %19 = vsyncpa [#allocation6 + $0x1], 0 }
   0x9   :  { %20 = vsyncpa [#allocation9], 0 }
   0xa   :  { %22 = vsyncpa [#allocation9 + $0x1], 0 }
   0xb   :  { %23 = vsyncpa [#allocation12], 0 }
   0xc   :  { %24 = vsyncpa [#allocation4], 0 }
   0xd   :  { %26 = vsyncpa [#allocation4 + $0x1], 0  ;;  %s2567_s30 = smov 0   ;;  %s2569_s10 = smov 0  }
   0xe   :  { %s2571_s11 = smov 0   ;;  %s2573_s12 = smov 0  }
   0xf LB: > { %3130 = sst [smem:[#allocation21_spill]] %s2491_s30  ;;  %s2588_s13 = sadd.s32 4294967295, %s2503_s12   ;;  %s2503_s12 = sphi %s2573_s12, %s3167_s12   ;;  %s2499_s11 = sphi %s2571_s11, %s3171_s11   ;;  %s2495_s10 = sphi %s2569_s10, %s3170_s10   ;;  %s2491_s30 = sphi %s2567_s30, %s3169_s30  }
  0x10   : > { %s1861_s14 = sadd.s32 4294967294, %s2503_s12   ;;  %p52_p0 = scmp.ne.s32.totalorder %s2495_s10, %s2491_s30 }
  0x11   : > { %p3108_p1 = scmp.eq.s32.totalorder %s2588_s13, 0  ;;  %p265_p3 = scmp.eq.s32.totalorder %s1861_s14, 1 }
  0x12   : > { %p1862_p5 = scmp.ge.s32.totalorder %s2503_s12, 1  ;;  %p272_p7 = scmp.lt.s32.totalorder %s2503_s12, 3 }
  0x13   : > { %p2597_p4 = por %p3108_p1, %p52_p0  ;;  %p2602_p6 = por %p265_p3, %p52_p0 }
  0x14   : > { %p2607_p8 = pnand %p1862_p5, %p272_p7  ;;  %s2505_s18 = smov [#allocation10]  }
  0x15   : > { %s3131_s15 = scalar_select %p2597_p4, 1, 0 }
  0x16   : > { %s3132_s16 = scalar_select %p2602_p6, 1, 0 }
  0x17   : > { %s3134_s17 = scalar_select %p2607_p8, 1, 0 }
  0x18   : > { %3133 = sst [smem:[#allocation22_spill]] %s3132_s16  ;;  %s284_s19 = sshll.u32 %s2505_s18, 4  ;;  %s2611_s19 = int_to_ptr.vmem [resolvable:$true] %s284_s19 }
  0x19   : > { %p2127_p9 = pneg %p2607_p8  ;;  %s2506_s21 = smov [#allocation11]  }
  0x1a   : > { %s300_s22 = sshll.u32 %s2506_s21, 4  ;;  %s3136_s4 = sld [smem:[#allocation26_spill]]  ;;  %s2622_s22 = int_to_ptr.vmem [resolvable:$true] %s300_s22 }
  0x1b   : > { %p2618_p11 = pnand %p2127_p9, %p3108_p1 }
  0x1d   : > { %s3135_s20 = scalar_select %p2618_p11, 1, 0 }
  0x1e   : > { %p2632_p13 = pneg %p2618_p11 }
  0x20   : > { %s2217_s25 = scalar_lea.hbm %s3136_s4, 256 }
  0x21   : > { %p2218_p12 = scmp.ne.s32.totalorder %s3136_s4, %s2217_s25  ;;  %p2224_p5 = scmp.lt.u32.totalorder %s2217_s25, %s3136_s4 }
  0x22   : > { %s3137_s28 = scalar_select %p2632_p13, 1, 0 }
  0x23   : > { %p2220_p0 = pnand %p2632_p13, %p2218_p12 }
  0x25   : > { %p2221_p3 = pneg %p2220_p0 }
  0x27   : > { %p2226_p7 = pnand %p2224_p5, %p2221_p3 }
  0x29   : > { %2229 = shalt.err (!%p2226_p7)
}
  0x2a   : > { %s2230_s18 = scalar_lea.vmem %s2611_s19, 256  ;;  %p2238_p2 = scmp.lt.s32.totalorder %s2611_s19, %s2611_s19 }
  0x2b   : > { %p2231_p9 = scmp.ne.s32.totalorder %s2611_s19, %s2230_s18  ;;  %p2239_p6 = scmp.lt.s32.totalorder %s2230_s18, %s2230_s18 }
  0x2d   : > { %p2233_p10 = pnand %p2231_p9, %p2632_p13  ;;  %p2240_p12 = por %p2239_p6, %p2238_p2 }
  0x2f   : > { %p2234_p1 = pneg %p2233_p10 }
  0x31   : > { %p2241_p0 = pnand %p2240_p12, %p2234_p1 }
  0x33   : > { %2244 = shalt.err (!%p2241_p0)
}
  0x34   : > { %s3112_s21 = smov 64   ;;  %s3113_s23 = smov 4  }
  0x35   : > { %2130 = dma.hbm_to_vmem [thread:$0]  (!%p2618_p11), %s3136_s4, 256, %s2611_s19, [#allocation9], %s3112_s21, %s3112_s21, %s3113_s23  }
  0x36   : > { %s3138_s6 = sld [smem:[#allocation27_spill]] }
  0x3c   : > { %s2245_s29 = scalar_lea.hbm %s3138_s6, 256 }
  0x3d   : > { %p2246_p1 = scmp.ne.s32.totalorder %s3138_s6, %s2245_s29  ;;  %p2252_p10 = scmp.lt.u32.totalorder %s2245_s29, %s3138_s6 }
  0x3f   : > { %p2248_p2 = pnand %p2246_p1, %p2632_p13 }
  0x41   : > { %p2249_p6 = pneg %p2248_p2 }
  0x43   : > { %p2254_p3 = pnand %p2252_p10, %p2249_p6 }
  0x45   : > { %2257 = shalt.err (!%p2254_p3)
}
  0x46   : > { %s2258_s19 = scalar_lea.vmem %s2622_s22, 256  ;;  %p2266_p12 = scmp.lt.s32.totalorder %s2622_s22, %s2622_s22 }
  0x47   : > { %p2259_p5 = scmp.ne.s32.totalorder %s2622_s22, %s2258_s19  ;;  %p2267_p0 = scmp.lt.s32.totalorder %s2258_s19, %s2258_s19 }
  0x49   : > { %p2261_p7 = pnand %p2259_p5, %p2632_p13  ;;  %p2268_p1 = por %p2267_p0, %p2266_p12 }
  0x4b   : > { %p2262_p9 = pneg %p2261_p7 }
  0x4d   : > { %p2269_p2 = pnand %p2268_p1, %p2262_p9 }
  0x4f   : > { %2272 = shalt.err (!%p2269_p2)
}
  0x50   : > { %2133 = dma.hbm_to_vmem [thread:$0]  (!%p2618_p11), %s3138_s6, 256, %s2622_s22, [#allocation12], %s3112_s21, %s3112_s21, %s3113_s23  }
  0x51   : > { %s2683_s24 = sadd.s32 1, %s2503_s12   ;;  %s39_s25 = sadd.s32 1, %s2499_s11 }
  0x52   : > { %3139 = sst [smem:[#allocation23_spill]] %s2683_s24  ;;  %s36_s26 = ssub.s32 %s2503_s12, %s2683_s24 }
  0x53   : > { %p46_p6 = scmp.ne.s32.totalorder %s2499_s11, %s2495_s10  ;;  %p37_p10 = scmp.eq.s32.totalorder %s36_s26, 0 }
  0x54   : > { %p47_p3 = scmp.eq.s32.totalorder %s2503_s12, 0  ;;  %p3140_p5 = scmp.eq.s32.totalorder %s2588_s13, 1 }
  0x55   : > { %p2157_p9 = scmp.lt.s32.totalorder %s2503_s12, 2  ;;  %s3111_s14 = sand.u32 1, %s2499_s11  }
  0x56   : > { %p2693_p7 = por %p3140_p5, %p46_p6  ;;  %p48_p12 = por %p47_p3, %p46_p6 }
  0x57   : > { %s2699_s29 = scalar_select %p37_p10, %s2499_s11, %s39_s25  }
  0x58   : > { %s3141_s27 = scalar_select %p2693_p7, 1, 0 }
  0x59   : > { %3142 = sst [smem:[#allocation24_spill]] %s2699_s29  ;;  %s2704_s22 = sshll.u32 %s3111_s14, 3 }
  0x5a   : > { %s2707_s18 = sshll.u32 %s2503_s12, 7  ;;  %p2709_p0 = pnand %p2157_p9, %p48_p12 }
  0x5b   : > { %s3118_s30 = sand.u32 1, %s2503_s12   ;;  %s3144_s1 = sld [smem:[#allocation25_spill]] }
  0x5c   : > { %s3143_s19 = scalar_select %p2709_p0, 1, 0 }
  0x5d   : > { %s352_s14 = scalar_lea.vmem [#allocation5], %s2704_s22  ;;  %s2725_s23 = scalar_lea.sflag [#allocation6], %s3118_s30 }
  0x5e   : > { %s359_s21 = sshll.u32 %s352_s14, 4  ;;  %p2731_p2 = pneg %p2709_p0  ;;  %s2721_s21 = int_to_ptr.vmem [resolvable:$true] %s359_s21 }
  0x61   : > { %s2718_s25 = scalar_lea.hbm %s3144_s1, %s2707_s18  ;;  %s2278_s14 = scalar_lea.hbm %s3144_s1, 256 }
  0x62   : > { %s2273_s4 = scalar_lea.hbm %s2718_s25, 128  ;;  %p2279_p3 = scmp.lt.u32.totalorder %s2718_s25, %s3144_s1 }
  0x63   : > { %p2274_p1 = scmp.ne.s32.totalorder %s2718_s25, %s2273_s4  ;;  %p2280_p5 = scmp.lt.u32.totalorder %s2278_s14, %s2273_s4 }
  0x64   : > { %p2282_p12 = scmp.lt.u32.totalorder %s2273_s4, %s2718_s25 }
  0x65   : > { %p2276_p6 = pnand %p2731_p2, %p2274_p1  ;;  %p2281_p9 = por %p2280_p5, %p2279_p3 }
  0x67   : > { %p2277_p10 = pneg %p2276_p6  ;;  %p2283_p7 = por %p2282_p12, %p2281_p9 }
  0x69   : > { %p2284_p4 = pnand %p2283_p7, %p2277_p10 }
  0x6b   : > { %2287 = shalt.err (!%p2284_p4)
}
  0x6c   : > { %s2288_s30 = scalar_lea.vmem %s2721_s21, 128  ;;  %s2509_s16 = smov [#allocation5]  }
  0x6d   : > { %p2289_p1 = scmp.ne.s32.totalorder %s2721_s21, %s2288_s30  ;;  %s2293_s26 = sshll.u32 %s2509_s16, 4  ;;  %s2294_s26 = int_to_ptr.vmem [resolvable:$false] %s2293_s26 }
  0x6e   : > { %s2295_s24 = scalar_lea.vmem %s2294_s26, 256  ;;  %p2296_p11 = scmp.lt.s32.totalorder %s2721_s21, %s2294_s26 }
  0x6f   : > { %p2291_p6 = pnand %p2289_p1, %p2731_p2  ;;  %p2297_p13 = scmp.lt.s32.totalorder %s2295_s24, %s2288_s30 }
  0x71   : > { %p2292_p8 = pneg %p2291_p6  ;;  %p2298_p3 = por %p2297_p13, %p2296_p11 }
  0x73   : > { %p2299_p5 = pnand %p2298_p3, %p2292_p8 }
  0x75   : > { %2302 = shalt.err (!%p2299_p5)
}
  0x76   : > { %2143 = dma.hbm_to_vmem [thread:$0]  (!%p2709_p0), %s2718_s25, 128, %s2721_s21, %s2725_s23  }
  0x77   : > { %s2510_s4 = smov [#allocation13]   ;;  %s2303_s16 = scalar_lea.hbm %s3105_s7, 256 }
  0x78   : > { %s313_s29 = sshll.u32 %s2510_s4, 4  ;;  %p2304_p4 = scmp.ne.s32.totalorder %s3105_s7, %s2303_s16  ;;  %s314_s29 = int_to_ptr.vmem [resolvable:$true] %s313_s29 }
  0x79   : > { %p3146_p8 = scmp.ne.s32.totalorder %s3137_s28, 0  ;;  %p2310_p7 = scmp.lt.u32.totalorder %s2303_s16, %s3105_s7 }
  0x7b   : > { %p2306_p11 = pnand %p2304_p4, %p3146_p8 }
  0x7d   : > { %p2307_p13 = pneg %p2306_p11 }
  0x7f   : > { %p2312_p10 = pnand %p2310_p7, %p2307_p13 }
  0x81   : > { %2315 = shalt.err (!%p2312_p10)
}
  0x82   : > { %s2316_s21 = scalar_lea.vmem %s314_s29, 256  ;;  %p2324_p6 = scmp.lt.s32.totalorder %s314_s29, %s314_s29 }
  0x83   : > { %p2317_p9 = scmp.ne.s32.totalorder %s314_s29, %s2316_s21  ;;  %p2325_p3 = scmp.lt.s32.totalorder %s2316_s21, %s2316_s21 }
  0x85   : > { %p2319_p12 = pnand %p2317_p9, %p3146_p8  ;;  %p2326_p5 = por %p2325_p3, %p2324_p6 }
  0x87   : > { %p2320_p1 = pneg %p2319_p12 }
  0x89   : > { %p2327_p0 = pnand %p2326_p5, %p2320_p1 }
  0x8b   : > { %2330 = shalt.err (!%p2327_p0)
}
  0x8c   : > { %p3147_p4 = scmp.ne.s32.totalorder %s3135_s20, 0  ;;  %s3148_s1 = smov 4  }
  0x8d   : > { %s3149_s9 = smov 64   ;;  %s2780_s16 = scalar_lea.hbm %s3098_s0, %s2707_s18 }
  0x8e   : > { %2136 = dma.hbm_to_vmem [thread:$0]  (!%p3147_p4), %s3105_s7, 256, %s314_s29, [#allocation12], %s3149_s9, %s3149_s9, %s3148_s1  }
  0x8f   : > { %s334_s20 = scalar_lea.vmem [#allocation2], %s2704_s22  ;;  %s3150_s30 = sand.u32 1, %s2499_s11  }
  0x90   : > { %s341_s26 = sshll.u32 %s334_s20, 4  ;;  %s331_s24 = scalar_lea.sflag [#allocation3], %s3150_s30  ;;  %s342_s26 = int_to_ptr.vmem [resolvable:$true] %s341_s26 }
  0x91   : > { %s2331_s21 = scalar_lea.hbm %s2780_s16, 128  ;;  %s2336_s9 = scalar_lea.hbm %s3098_s0, 256 }
  0x92   : > { %p2332_p0 = scmp.ne.s32.totalorder %s2780_s16, %s2331_s21  ;;  %p2337_p13 = scmp.lt.u32.totalorder %s2780_s16, %s3098_s0 }
  0x93   : > { %p2338_p7 = scmp.lt.u32.totalorder %s2336_s9, %s2331_s21  ;;  %p2340_p9 = scmp.lt.u32.totalorder %s2331_s21, %s2780_s16 }
  0x94   : > { %p2334_p8 = pnand %p2332_p0, %p2731_p2 }
  0x95   : > { %p2339_p10 = por %p2338_p7, %p2337_p13 }
  0x96   : > { %p2335_p11 = pneg %p2334_p8 }
  0x97   : > { %p2341_p12 = por %p2340_p9, %p2339_p10 }
  0x99   : > { %p2342_p1 = pnand %p2341_p12, %p2335_p11 }
  0x9b   : > { %2345 = shalt.err (!%p2342_p1)
}
  0x9c   : > { %s2346_s28 = scalar_lea.vmem %s342_s26, 128  ;;  %s2511_s14 = smov [#allocation2]  }
  0x9d   : > { %p2347_p6 = scmp.ne.s32.totalorder %s342_s26, %s2346_s28  ;;  %s2351_s20 = sshll.u32 %s2511_s14, 4  ;;  %s2352_s20 = int_to_ptr.vmem [resolvable:$false] %s2351_s20 }
  0x9e   : > { %s2353_s30 = scalar_lea.vmem %s2352_s20, 256  ;;  %p2354_p4 = scmp.lt.s32.totalorder %s342_s26, %s2352_s20 }
  0x9f   : > { %p2349_p3 = pnand %p2347_p6, %p2731_p2  ;;  %p2355_p0 = scmp.lt.s32.totalorder %s2353_s30, %s2346_s28 }
  0xa1   : > { %p2350_p5 = pneg %p2349_p3  ;;  %p2356_p8 = por %p2355_p0, %p2354_p4 }
  0xa3   : > { %p2357_p7 = pnand %p2356_p8, %p2350_p5 }
  0xa5   : > { %2360 = shalt.err (!%p2357_p7)
}
  0xa6   : > { %p3151_p13 = scmp.ne.s32.totalorder %s3143_s19, 0  ;;  %s2806_s1 = scalar_lea.hbm %s3100_s2, %s2707_s18 }
  0xa7   : > { %s370_s9 = scalar_lea.vmem [#allocation7], %s2704_s22  ;;  %s2361_s4 = scalar_lea.hbm %s2806_s1, 128 }
  0xa8   : > { %2140 = dma.hbm_to_vmem [thread:$0]  (!%p3151_p13), %s2780_s16, 128, %s342_s26, %s331_s24  }
  0xa9   : > { %s377_s25 = sshll.u32 %s370_s9, 4  ;;  %p2362_p11 = scmp.ne.s32.totalorder %s2806_s1, %s2361_s4  ;;  %s378_s25 = int_to_ptr.vmem [resolvable:$true] %s377_s25 }
  0xaa   : > { %s2366_s16 = scalar_lea.hbm %s3100_s2, 256  ;;  %p2367_p12 = scmp.lt.u32.totalorder %s2806_s1, %s3100_s2 }
  0xab   : > { %p2364_p10 = pnand %p2362_p11, %p2731_p2  ;;  %p2368_p1 = scmp.lt.u32.totalorder %s2366_s16, %s2361_s4 }
  0xac   : > { %p2370_p3 = scmp.lt.u32.totalorder %s2361_s4, %s2806_s1 }
  0xad   : > { %p2365_p9 = pneg %p2364_p10  ;;  %p2369_p6 = por %p2368_p1, %p2367_p12 }
  0xaf   : > { %p2371_p5 = por %p2370_p3, %p2369_p6 }
  0xb1   : > { %p2372_p4 = pnand %p2371_p5, %p2365_p9 }
  0xb3   : > { %2375 = shalt.err (!%p2372_p4)
}
  0xb4   : > { %s2376_s20 = scalar_lea.vmem %s378_s25, 128  ;;  %s2512_s30 = smov [#allocation7]  }
  0xb5   : > { %p2377_p0 = scmp.ne.s32.totalorder %s378_s25, %s2376_s20  ;;  %s2381_s21 = sshll.u32 %s2512_s30, 4  ;;  %s2382_s21 = int_to_ptr.vmem [resolvable:$false] %s2381_s21 }
  0xb6   : > { %s2383_s29 = scalar_lea.vmem %s2382_s21, 256  ;;  %p2384_p11 = scmp.lt.s32.totalorder %s378_s25, %s2382_s21 }
  0xb7   : > { %p2379_p8 = pnand %p2377_p0, %p2731_p2  ;;  %p2385_p10 = scmp.lt.s32.totalorder %s2383_s29, %s2376_s20 }
  0xb9   : > { %p2380_p7 = pneg %p2379_p8  ;;  %p2386_p13 = por %p2385_p10, %p2384_p11 }
  0xbb   : > { %p2387_p1 = pnand %p2386_p13, %p2380_p7 }
  0xbd   : > { %2390 = shalt.err (!%p2387_p1)
}
  0xbe   : > { %p3152_p12 = scmp.ne.s32.totalorder %s3143_s19, 0  ;;  %s2831_s28 = scalar_lea.hbm %s3101_s3, %s2707_s18 }
  0xbf   : > { %s388_s14 = scalar_lea.vmem [#allocation8], %s2704_s22  ;;  %s3153_s26 = sand.u32 1, %s2503_s12  }
  0xc0   : > { %2146 = dma.hbm_to_vmem [thread:$0]  (!%p3152_p12), %s2806_s1, 128, %s378_s25, %s2725_s23  }
  0xc1   : > { %s395_s16 = sshll.u32 %s388_s14, 4  ;;  %s385_s24 = scalar_lea.sflag [#allocation9], %s3153_s26  ;;  %s396_s16 = int_to_ptr.vmem [resolvable:$true] %s395_s16 }
  0xc2   : > { %s2391_s20 = scalar_lea.hbm %s2831_s28, 128  ;;  %s2396_s25 = scalar_lea.hbm %s3101_s3, 256 }
  0xc3   : > { %p2392_p13 = scmp.ne.s32.totalorder %s2831_s28, %s2391_s20  ;;  %p2397_p3 = scmp.lt.u32.totalorder %s2831_s28, %s3101_s3 }
  0xc4   : > { %p2398_p5 = scmp.lt.u32.totalorder %s2396_s25, %s2391_s20  ;;  %p2400_p0 = scmp.lt.u32.totalorder %s2391_s20, %s2831_s28 }
  0xc5   : > { %p2394_p9 = pnand %p2392_p13, %p2731_p2 }
  0xc6   : > { %p2399_p4 = por %p2398_p5, %p2397_p3 }
  0xc7   : > { %p2395_p6 = pneg %p2394_p9 }
  0xc8   : > { %p2401_p8 = por %p2400_p0, %p2399_p4 }
  0xca   : > { %p2402_p7 = pnand %p2401_p8, %p2395_p6 }
  0xcc   : > { %2405 = shalt.err (!%p2402_p7)
}
  0xcd   : > { %s2406_s22 = scalar_lea.vmem %s396_s16, 128  ;;  %s2513_s21 = smov [#allocation8]  }
  0xce   : > { %p2407_p11 = scmp.ne.s32.totalorder %s396_s16, %s2406_s22  ;;  %s2411_s29 = sshll.u32 %s2513_s21, 4  ;;  %s2412_s29 = int_to_ptr.vmem [resolvable:$false] %s2411_s29 }
  0xcf   : > { %s2413_s9 = scalar_lea.vmem %s2412_s29, 256  ;;  %p2414_p13 = scmp.lt.s32.totalorder %s396_s16, %s2412_s29 }
  0xd0   : > { %p2409_p10 = pnand %p2407_p11, %p2731_p2  ;;  %p2415_p9 = scmp.lt.s32.totalorder %s2413_s9, %s2406_s22 }
  0xd2   : > { %p2410_p1 = pneg %p2409_p10  ;;  %p2416_p12 = por %p2415_p9, %p2414_p13 }
  0xd4   : > { %p2417_p3 = pnand %p2416_p12, %p2410_p1 }
  0xd6   : > { %2420 = shalt.err (!%p2417_p3)
}
  0xd7   : > { %p3154_p5 = scmp.ne.s32.totalorder %s3143_s19, 0  ;;  %p3155_p6 = scmp.ne.s32.totalorder %s3134_s17, 0 }
  0xd8   : > { %s2856_s6 = sand.u32 (!%p3155_p6), 1, %s2495_s10   ;;  %p3156_p2 = scmp.ne.s32.totalorder (!%p3155_p6), %s3131_s15, 0 }
  0xd9   : > { %2149 = dma.hbm_to_vmem [thread:$0]  (!%p3154_p5), %s2831_s28, 128, %s396_s16, %s385_s24  }
  0xda   : > { %404 = sbr.rel (%p3155_p6) target bundleno = 1474 (0x5c2), region = 56  ;;  %s2859_s4 = sshll.u32 (!%p3155_p6), %s2856_s6, 3 }
  0xdb   : > { %s407_s14 = scalar_lea.sflag (!%p3155_p6), [#allocation3], %s2856_s6  ;;  %s410_s26 = scalar_lea.vmem (!%p3155_p6), [#allocation2], %s2859_s4 }
  0xe1   : > { %2466 = dma.done.wait (%p3156_p2), %s407_s14, 128  }
  0xe2   : > { %2468 = vsyncadd (%p3156_p2), %s407_s14, 4294967168  ;;  %s415_s17 = sand.u32 1, %s2588_s13   ;;  %s419_s28 = scalar_lea.vmem [#allocation5], %s2859_s4 }
  0xe3   : > { %s416_s19 = scalar_lea.sflag [#allocation6], %s415_s17 }
  0xe4   : > { %2470 = dma.done.wait (%p3156_p2), %s416_s19, 256  }
  0xe5   : > { %2472 = vsyncadd (%p3156_p2), %s416_s19, 4294967040  ;;  %s428_s16 = scalar_lea.vmem [#allocation7], %s2859_s4  ;;  %s434_s24 = scalar_lea.sflag [#allocation9], %s415_s17 }
  0xe6   : > { %s437_s20 = scalar_lea.vmem [#allocation8], %s2859_s4 }
  0xe7   : > { %2474 = dma.done.wait (%p3156_p2), %s434_s24, 128  }
  0xe8   : > { %2476 = vsyncadd (%p3156_p2), %s434_s24, 4294967168  ;;  %p3157_p12 = scmp.eq.s32.totalorder %s2588_s13, 0 }
  0xea   : > { %2478 = dma.done.wait (%p3157_p12), [#allocation9], 256   ;;  %p3158_p4 = pmov %p3157_p12 }
  0xec   : > { %2480 = vsyncadd (%p3158_p4), [#allocation9], 4294967040  ;;  %p3159_p0 = pmov %p3158_p4 }
  0xee   : > { %2482 = dma.done.wait (%p3159_p0), [#allocation12], 512   ;;  %p3160_p8 = pmov %p3159_p0 }
  0xef   : > { %v2514_v0 = vmov 0.0   ;;  %vm2515_vm0 = vmmov 0   ;;  %vm510_vm1 = vcmask 261120   ;;  %v506_v1 = vld [vmem:[#allocation10] sm:$0xf]  ;;  %v502_v15 = vld [vmem:[%s419_s28] sm:$0xff] }
  0xf0   : > { %2484 = vsyncadd (%p3160_p8), [#allocation12], 4294966784  ;;  %1961 = vmatprep.subr.bf16.mxu0 %v2514_v0  ;;  %1967 = vmatprep.subr.bf16.mxu1 %v2514_v0  ;;  %v507_v2 = vld [vmem:[#allocation10 + $0x4] sm:$0xf]  ;;  %v515_v3 = vsel %vm510_vm1, %v506_v1, 0  ;;  %v503_v18 = vpack.c.bf16 %v502_v15, %v502_v15  ;;  %vm1053_vm2 = vcmask 64512  }
  0xf1   : > { %1963 = vmatprep.mubr.msk.bf16.mxu0 %vm2515_vm0, %v2514_v0  ;;  %1969 = vmatprep.mubr.msk.bf16.mxu1 %vm2515_vm0, %v2514_v0  ;;  %v558_v4 = vsel %vm510_vm1, %v507_v2, 0  ;;  %v500_v5 = vld [vmem:[%s410_s26] sm:$0xff]  ;;  %v865_v21 = vld [vmem:[#allocation11] sm:$0xf]  ;;  %v866_v23 = vld [vmem:[#allocation11 + $0x4] sm:$0xf] }
  0xf2   : > { %1962 = vmatpush3.bf16.xpose.msra.mxu0 %v515_v3  ;;  %1968 = vmatpush3.bf16.xpose.msra.mxu1 %v558_v4  ;;  %v508_v6 = vld [vmem:[#allocation10 + $0x8] sm:$0xf]  ;;  %v509_v7 = vld [vmem:[#allocation10 + $0xc] sm:$0xf]  ;;  %v501_v8 = vpack.c.bf16 %v500_v5, %v500_v5  ;;  %v686_v11 = vld [vmem:[%s3103_s5] sm:$0xf] }
  0xf3   : > { %1973 = vmatprep.subr.bf16.mxu0 %v2514_v0  ;;  %1979 = vmatprep.subr.bf16.mxu1 %v2514_v0  ;;  %v601_v9 = vsel %vm510_vm1, %v508_v6, 0  ;;  %v644_v10 = vsel %vm510_vm1, %v509_v7, 0  ;;  %v687_v12 = vld [vmem:[%s3103_s5 + $0x4] sm:$0xf]  ;;  %v694_v13 = vsel %vm510_vm1, %v686_v11, 0  ;;  %v873_v22 = vsel %vm510_vm1, %v865_v21, 0 }
  0xf4   : > { %v737_v14 = vsel %vm510_vm1, %v687_v12, 0  ;;  %v688_v16 = vld [vmem:[%s3103_s5 + $0x8] sm:$0xf]  ;;  %v689_v17 = vld [vmem:[%s3103_s5 + $0xc] sm:$0xf]  ;;  %v916_v24 = vsel %vm510_vm1, %v866_v23, 0 }
  0xf5   : > { %v780_v19 = vsel %vm510_vm1, %v688_v16, 0  ;;  %v823_v20 = vsel %vm510_vm1, %v689_v17, 0  ;;  %v504_v25 = vld [vmem:[%s428_s16] sm:$0xff]  ;;  %v867_v27 = vld [vmem:[#allocation11 + $0x8] sm:$0xf]  ;;  %vm1293_vm3 = vcmask 1043456  }
  0xf6   : > { %v505_v26 = vpack.c.bf16 %v504_v25, %v504_v25  ;;  %v959_v28 = vsel %vm510_vm1, %v867_v27, 0  ;;  %v868_v29 = vld [vmem:[#allocation11 + $0xc] sm:$0xf]  ;;  %s1910_s14 = sshll.u32 %s2588_s13, 7  ;;  %s498_s26 = scalar_lea.vmem [#allocation14], %s2859_s4 }
  0xf7   : > { %v1002_v30 = vsel %vm510_vm1, %v868_v29, 0  ;;  %s1697_s17 = sshll.u32 %s498_s26, 4  ;;  %s3161_s16 = sld [smem:[#allocation28_spill]]  ;;  %s3055_s17 = int_to_ptr.vmem [resolvable:$true] %s1697_s17 }
  0xf8   : > { %s2421_s13 = scalar_lea.vmem %s3055_s17, 128  ;;  %p3162_p11 = scmp.ne.s32.totalorder %s3141_s27, 0 }
  0xf9   : > { %1964 = vmatmul.mubr.msk.bf16.vlgmr.msra.gmra.mrb[0].mxu0 %vm510_vm1, %v501_v8  ;;  %1970 = vmatmul.mubr.msk.bf16.vlgmr.msra.gmra.mrb[0].mxu1 %vm510_vm1, %v501_v8  ;;  %p2422_p7 = scmp.ne.s32.totalorder %s3055_s17, %s2421_s13  ;;  %s2516_s4 = smov [#allocation14]  }
  0xfa   : > { %1974 = vmatpush3.bf16.xpose.msra.mxu0 %v601_v9  ;;  %1980 = vmatpush3.bf16.xpose.msra.mxu1 %v644_v10  ;;  %s2425_s15 = sshll.u32 %s2516_s4, 4  ;;  %s2426_s15 = int_to_ptr.vmem [resolvable:$false] %s2425_s15 }
  0xfb   : > { %1975 = vmatprep.mubr.msk.bf16.mxu0 %vm2515_vm0, %v2514_v0  ;;  %1981 = vmatprep.mubr.msk.bf16.mxu1 %vm2515_vm0, %v2514_v0  ;;  %p2423_p10 = pnand %p2422_p7, %p3162_p11  ;;  %s2427_s23 = scalar_lea.vmem %s2426_s15, 256 }
  0xfc   : > { %1985 = vmatprep.subr.bf16.mxu0 %v2514_v0  ;;  %1991 = vmatprep.subr.bf16.mxu1 %v2514_v0  ;;  %p2428_p13 = scmp.lt.s32.totalorder %s3055_s17, %s2426_s15  ;;  %p2429_p9 = scmp.lt.s32.totalorder %s2427_s23, %s2421_s13 }
  0xfd   : > { %s3053_s24 = scalar_lea.hbm %s3161_s16, %s1910_s14  ;;  %p2424_p1 = pneg %p2423_p10 }
  0xfe   : > { %p2430_p3 = por %p2429_p9, %p2428_p13 }
 0x100   : > { %p2431_p5 = pnand %p2430_p3, %p2424_p1 }
 0x101   : > { %1976 = vmatmul.mubr.msk.bf16.vlgmr.msra.gmra.mrb[4].mxu0 %vm510_vm1, %v501_v8  ;;  %1982 = vmatmul.mubr.msk.bf16.vlgmr.msra.gmra.mrb[4].mxu1 %vm510_vm1, %v501_v8 }
 0x102   : > { %1986 = vmatpush3.bf16.xpose.msra.mxu0 %v694_v13  ;;  %1992 = vmatpush3.bf16.xpose.msra.mxu1 %v737_v14 }
 0x103   : > { %1987 = vmatprep.mubr.msk.bf16.mxu0 %vm2515_vm0, %v2514_v0  ;;  %1993 = vmatprep.mubr.msk.bf16.mxu1 %vm2515_vm0, %v2514_v0 }
 0x104   : > { %1997 = vmatprep.subr.bf16.mxu0 %v2514_v0  ;;  %2003 = vmatprep.subr.bf16.mxu1 %v2514_v0 }
 0x109   : > { %1988 = vmatmul.mubr.msk.bf16.vlgmr.msra.gmra.mrb[8].mxu0 %vm510_vm1, %v503_v18  ;;  %1994 = vmatmul.mubr.msk.bf16.vlgmr.msra.gmra.mrb[8].mxu1 %vm510_vm1, %v503_v18 }
 0x10a   : > { %1998 = vmatpush3.bf16.xpose.msra.mxu0 %v780_v19  ;;  %2004 = vmatpush3.bf16.xpose.msra.mxu1 %v823_v20 }
 0x10b   : > { %1999 = vmatprep.mubr.msk.bf16.mxu0 %vm2515_vm0, %v2514_v0  ;;  %2005 = vmatprep.mubr.msk.bf16.mxu1 %vm2515_vm0, %v2514_v0 }
 0x10c   : > { %2009 = vmatprep.subr.bf16.mxu0 %v2514_v0  ;;  %2015 = vmatprep.subr.bf16.mxu1 %v2514_v0 }
 0x111   : > { %2000 = vmatmul.mubr.msk.bf16.vlgmr.msra.gmra.mrb[12].mxu0 %vm510_vm1, %v503_v18  ;;  %2006 = vmatmul.mubr.msk.bf16.vlgmr.msra.gmra.mrb[12].mxu1 %vm510_vm1, %v503_v18 }
 0x112   : > { %2011 = vmatprep.mubr.msk.bf16.mxu0 %vm2515_vm0, %v2514_v0  ;;  %2017 = vmatprep.mubr.msk.bf16.mxu1 %vm2515_vm0, %v2514_v0 }
 0x113   : > { %2010 = vmatpush3.bf16.xpose.msra.mxu0 %v873_v22  ;;  %2016 = vmatpush3.bf16.xpose.msra.mxu1 %v916_v24 }
 0x114   : > { %2021 = vmatprep.subr.bf16.mxu0 %v2514_v0  ;;  %2027 = vmatprep.subr.bf16.mxu1 %v2514_v0 }
 0x11a   : > { %2012 = vmatmul.mubr.msk.bf16.vlgmr.msra.gmra.mrb[16].mxu0 %vm510_vm1, %v505_v26  ;;  %2018 = vmatmul.mubr.msk.bf16.vlgmr.msra.gmra.mrb[16].mxu1 %vm510_vm1, %v505_v26 }
 0x11b   : > { %2022 = vmatpush3.bf16.xpose.msra.mxu0 %v959_v28  ;;  %2023 = vmatprep.mubr.msk.bf16.mxu0 %vm2515_vm0, %v2514_v0 }
 0x11c   : > { %2033 = vmatprep.subr.bf16.mxu0 %v2514_v0  ;;  %2028 = vmatpush3.bf16.xpose.msra.mxu1 %v1002_v30 }
 0x11d   : > { %2029 = vmatprep.mubr.msk.bf16.mxu1 %vm2515_vm0, %v2514_v0  ;;  %2039 = vmatprep.subr.bf16.mxu1 %v2514_v0 }
 0x122   : > { %2024 = vmatmul.mubr.msk.bf16.vlgmr.msra.gmra.mrb[20].mxu0 %vm510_vm1, %v505_v26 }
 0x123   : > { %2035 = vmatprep.mubr.msk.bf16.mxu0 %vm2515_vm0, %v2514_v0  ;;  %2030 = vmatmul.mubr.msk.bf16.vlgmr.msra.gmra.mrb[20].mxu1 %vm510_vm1, %v505_v26 }
 0x124   : > { %2041 = vmatprep.mubr.msk.bf16.mxu1 %vm2515_vm0, %v2514_v0 }
 0x1cc   : > { %v551_v31 = vpop.f32.mrb[0].mxu0  ;;  %v594_v32 = vpop.f32.mrb[0].mxu1 }
 0x1cd   : > { %v1965_v33 = vpop.f32.mrb[1].mxu0  ;;  %v1971_v34 = vpop.f32.mrb[1].mxu1  ;;  %v1044_v61 = vpack.c.bf16 %v551_v31, %v551_v31  ;;  %v1045_v62 = vpack.c.bf16 %v594_v32, %v594_v32  ;;  %v1052_v32 = vld [vmem:[%s437_s20] sm:$0xff]  ;;  %s1684_s20 = scalar_lea.sflag [#allocation4], %s2856_s6 }
 0x1ce   : > { %v554_v35 = vpop.f32.mrb[2].mxu0  ;;  %v597_v36 = vpop.f32.mrb[2].mxu1 }
 0x1cf   : > { %v1966_v37 = vpop.f32.mrb[3].mxu0  ;;  %v1972_v38 = vpop.f32.mrb[3].mxu1 }
 0x1d4   : > { %v637_v39 = vpop.f32.mrb[4].mxu0  ;;  %v680_v40 = vpop.f32.mrb[4].mxu1 }
 0x1d5   : > { %v1977_v41 = vpop.f32.mrb[5].mxu0  ;;  %v1983_v42 = vpop.f32.mrb[5].mxu1  ;;  %v1046_v10 = vpack.c.bf16 %v637_v39, %v637_v39  ;;  %v1047_v11 = vpack.c.bf16 %v680_v40, %v680_v40 }
 0x1d6   : > { %v640_v43 = vpop.f32.mrb[6].mxu0  ;;  %v683_v44 = vpop.f32.mrb[6].mxu1 }
 0x1d7   : > { %v1978_v45 = vpop.f32.mrb[7].mxu0  ;;  %v1984_v46 = vpop.f32.mrb[7].mxu1 }
 0x1dc   : > { %v730_v47 = vpop.f32.mrb[8].mxu0  ;;  %v773_v48 = vpop.f32.mrb[8].mxu1 }
 0x1dd   : > { %v1048_v49 = vpack.c.bf16 %v730_v47, %v730_v47  ;;  %v1049_v50 = vpack.c.bf16 %v773_v48, %v773_v48  ;;  %v1989_v51 = vpop.f32.mrb[9].mxu0  ;;  %v1995_v52 = vpop.f32.mrb[9].mxu1 }
 0x1de   : > { %v733_v53 = vpop.f32.mrb[10].mxu0  ;;  %v776_v54 = vpop.f32.mrb[10].mxu1 }
 0x1df   : > { %v1058_v55 = vsel %vm1053_vm2, %v1048_v49, 0  ;;  %v1104_v56 = vsel %vm1053_vm2, %v1049_v50, 0  ;;  %v1990_v57 = vpop.f32.mrb[11].mxu0  ;;  %v1996_v58 = vpop.f32.mrb[11].mxu1 }
 0x1e0   : > { %2034 = vmatpush3.bf16.xpose.msra.mxu0 %v1058_v55  ;;  %2040 = vmatpush3.bf16.xpose.msra.mxu1 %v1104_v56 }
 0x1e1   : > { %2045 = vmatprep.subr.bf16.mxu0 %v2514_v0  ;;  %2051 = vmatprep.subr.bf16.mxu1 %v2514_v0 }
 0x1e4   : > { %v816_v59 = vpop.f32.mrb[12].mxu0  ;;  %v859_v60 = vpop.f32.mrb[12].mxu1 }
 0x1e5   : > { %v1050_v63 = vpack.c.bf16 %v816_v59, %v816_v59  ;;  %v1051_v1 = vpack.c.bf16 %v859_v60, %v859_v60  ;;  %v2001_v2 = vpop.f32.mrb[13].mxu0  ;;  %v2007_v3 = vpop.f32.mrb[13].mxu1 }
 0x1e6   : > { %v819_v4 = vpop.f32.mrb[14].mxu0  ;;  %v862_v5 = vpop.f32.mrb[14].mxu1 }
 0x1e7   : > { %v1150_v6 = vsel %vm1053_vm2, %v1050_v63, 0  ;;  %v1196_v7 = vsel %vm1053_vm2, %v1051_v1, 0  ;;  %v2002_v8 = vpop.f32.mrb[15].mxu0  ;;  %2036 = vmatmul.mubr.msk.bf16.vlgmr.msra.gmra.mrb[24].mxu0 %vm1053_vm2, %v1044_v61  ;;  %2042 = vmatmul.mubr.msk.bf16.vlgmr.msra.gmra.mrb[24].mxu1 %vm1053_vm2, %v1045_v62  ;;  %v2008_v9 = vpop.f32.mrb[15].mxu1 }
 0x1e8   : > { %2046 = vmatpush3.bf16.xpose.msra.mxu0 %v1150_v6  ;;  %2052 = vmatpush3.bf16.xpose.msra.mxu1 %v1196_v7 }
 0x1e9   : > { %2047 = vmatprep.mubr.msk.bf16.mxu0 %vm2515_vm0, %v2514_v0  ;;  %2053 = vmatprep.mubr.msk.bf16.mxu1 %vm2515_vm0, %v2514_v0 }
 0x1ea   : > { %2057 = vmatprep.subr.bf16.mxu0 %v2514_v0  ;;  %2063 = vmatprep.subr.bf16.mxu1 %v2514_v0 }
 0x1ed   : > { %v909_v12 = vpop.f32.mrb[16].mxu0  ;;  %v952_v18 = vpop.f32.mrb[16].mxu1 }
 0x1ee   : > { %v1286_v13 = vpack.c.bf16 %v909_v12, %v909_v12  ;;  %v2013_v14 = vpop.f32.mrb[17].mxu0  ;;  %v1287_v19 = vpack.c.bf16 %v952_v18, %v952_v18  ;;  %v2019_v20 = vpop.f32.mrb[17].mxu1 }
 0x1ef   : > { %2048 = vmatmul.mubr.msk.bf16.vlgmr.msra.gmra.mrb[28].mxu0 %vm1053_vm2, %v1046_v10  ;;  %2054 = vmatmul.mubr.msk.bf16.vlgmr.msra.gmra.mrb[28].mxu1 %vm1053_vm2, %v1047_v11  ;;  %v912_v15 = vpop.f32.mrb[18].mxu0  ;;  %v955_v21 = vpop.f32.mrb[18].mxu1 }
 0x1f0   : > { %2059 = vmatprep.mubr.msk.bf16.mxu0 %vm2515_vm0, %v2514_v0  ;;  %2065 = vmatprep.mubr.msk.bf16.mxu1 %vm2515_vm0, %v2514_v0  ;;  %v1295_v16 = vsel %vm1293_vm3, %v1286_v13, 0  ;;  %v2014_v17 = vpop.f32.mrb[19].mxu0  ;;  %v1341_v22 = vsel %vm1293_vm3, %v1287_v19, 0  ;;  %v2020_v23 = vpop.f32.mrb[19].mxu1 }
 0x1f1   : > { %2058 = vmatpush3.bf16.msra.mxu0 %v1295_v16  ;;  %2064 = vmatpush3.bf16.msra.mxu1 %v1341_v22 }
 0x1f2   : > { %2069 = vmatprep.subr.bf16.mxu0 %v2514_v0  ;;  %2075 = vmatprep.subr.bf16.mxu1 %v2514_v0 }
 0x1f5   : > { %v2992_v24 = vpop.f32.mrb[20].mxu0 }
 0x1f6   : > { %v2025_v25 = vpop.f32.mrb[21].mxu0  ;;  %v2995_v28 = vpop.f32.mrb[20].mxu1  ;;  %v1288_v18 = vpack.c.bf16 %v2992_v24, %v2992_v24 }
 0x1f7   : > { %v998_v26 = vpop.f32.mrb[22].mxu0  ;;  %v2031_v29 = vpop.f32.mrb[21].mxu1  ;;  %v1289_v25 = vpack.c.bf16 %v2995_v28, %v2995_v28 }
 0x1f8   : > { %v2026_v27 = vpop.f32.mrb[23].mxu0  ;;  %v1041_v30 = vpop.f32.mrb[22].mxu1  ;;  %v1387_v23 = vsel %vm1293_vm3, %v1288_v18, 0  ;;  %v1479_v29 = vld [vmem:[#allocation13] sm:$0xf] }
 0x1f9   : > { %v2032_v31 = vpop.f32.mrb[23].mxu1  ;;  %v1433_v30 = vsel %vm1293_vm3, %v1289_v25, 0 }
 0x2ba   : > { %v1094_v33 = vpop.f32.mrb[24].mxu0  ;;  %v1140_v34 = vpop.f32.mrb[24].mxu1 }
 0x2bb   : > { %v1095_v35 = vadd.f32 %v1094_v33, %v1052_v32  ;;  %v2037_v36 = vpop.f32.mrb[25].mxu0  ;;  %v2043_v37 = vpop.f32.mrb[25].mxu1  ;;  %v1141_v40 = vadd.f32 %v1140_v34, %v1052_v32 }
 0x2bc   : > { %v1097_v38 = vpop.f32.mrb[26].mxu0  ;;  %v1143_v39 = vpop.f32.mrb[26].mxu1  ;;  %v1480_v36 = vld [vmem:[#allocation13 + $0x4] sm:$0xf] }
 0x2bd   : > { %v2038_v41 = vpop.f32.mrb[27].mxu0  ;;  %v2044_v42 = vpop.f32.mrb[27].mxu1  ;;  %v1238_v43 = vsel %vm1053_vm2, %v1095_v35, -inf  ;;  %v1241_v44 = vsel %vm1053_vm2, %v1141_v40, -inf  ;;  %v1533_v37 = vsel %vm1293_vm3, %v1480_v36, 0 }
 0x2be   : > { %1239 = vmax.xlane.f32.xlu0 %v1238_v43  ;;  %v1481_v38 = vld [vmem:[#allocation13 + $0x8] sm:$0xf] }
 0x2bf   : > { %v1579_v42 = vsel %vm1293_vm3, %v1481_v38, 0 }
 0x2c2   : > { %v1232_v45 = vpop.f32.mrb[28].mxu1  ;;  %1242 = vmax.xlane.f32.xlu0 %v1241_v44  ;;  %v1186_v46 = vpop.f32.mrb[28].mxu0  ;;  %v1482_v44 = vld [vmem:[#allocation13 + $0xc] sm:$0xf] }
 0x2c3   : > { %v1187_v47 = vadd.f32 %v1186_v46, %v1052_v32  ;;  %v2049_v48 = vpop.f32.mrb[29].mxu0  ;;  %v2055_v49 = vpop.f32.mrb[29].mxu1  ;;  %v1233_v52 = vadd.f32 %v1232_v45, %v1052_v32  ;;  %v1487_v32 = vsel %vm1293_vm3, %v1479_v29, 0 }
 0x2c4   : > { %v1189_v50 = vpop.f32.mrb[30].mxu0  ;;  %v1235_v51 = vpop.f32.mrb[30].mxu1  ;;  %v1625_v49 = vsel %vm1293_vm3, %v1482_v44, 0 }
 0x2c5   : > { %v2050_v53 = vpop.f32.mrb[31].mxu0  ;;  %v2056_v54 = vpop.f32.mrb[31].mxu1  ;;  %v1244_v55 = vsel %vm1053_vm2, %v1187_v47, -inf  ;;  %v1247_v56 = vsel %vm1053_vm2, %v1233_v52, -inf }
 0x2c6   : > { %1245 = vmax.xlane.f32.xlu1 %v1244_v55 }
 0x2ca   : > { %1248 = vmax.xlane.f32.xlu1 %v1247_v56 }
 0x34b   : > { %v1240_v57 = vpop.xlane.xlu0 %1239 }
 0x34c   : > { %v1250_v58 = vsub.f32 %v1095_v35, %v1240_v57 }
 0x34e   : > { %v1254_v59 = vmul.f32 1.442695, %v1250_v58 }
 0x34f   : > { %v1243_v60 = vpop.xlane.xlu0 %1242 }
 0x350   : > { %2201 = vpow2.f32 %v1254_v59  ;;  %v1251_v61 = vsub.f32 %v1141_v40, %v1243_v60 }
 0x352   : > { %v1256_v62 = vmul.f32 1.442695, %v1251_v61 }
 0x353   : > { %v1246_v63 = vpop.xlane.xlu1 %1245 }
 0x354   : > { %2203 = vpow2.f32 %v1256_v62  ;;  %v1252_v1 = vsub.f32 %v1187_v47, %v1246_v63 }
 0x356   : > { %v1258_v2 = vmul.f32 1.442695, %v1252_v1 }
 0x357   : > { %v1249_v3 = vpop.xlane.xlu1 %1248 }
 0x358   : > { %2205 = vpow2.f32 %v1258_v2  ;;  %v1253_v4 = vsub.f32 %v1233_v52, %v1249_v3 }
 0x35a   : > { %v2202_v5 = vpop.eup %2201  ;;  %v1260_v6 = vmul.f32 1.442695, %v1253_v4 }
 0x35b   : > { %v1262_v7 = vsel %vm1053_vm2, %v2202_v5, 0.0 }
 0x35c   : > { %2207 = vpow2.f32 %v1260_v6  ;;  %1263 = vadd.xlane.f32.xlu0 %v1262_v7 }
 0x35e   : > { %v2204_v8 = vpop.eup %2203 }
 0x35f   : > { %v1265_v9 = vsel %vm1053_vm2, %v2204_v8, 0.0 }
 0x360   : > { %1266 = vadd.xlane.f32.xlu1 %v1265_v9 }
 0x362   : > { %v2206_v10 = vpop.eup %2205 }
 0x363   : > { %v1268_v11 = vsel %vm1053_vm2, %v2206_v10, 0.0 }
 0x364   : > { %1269 = vadd.xlane.f32.xlu0 %v1268_v11 }
 0x366   : > { %v2208_v12 = vpop.eup %2207 }
 0x367   : > { %v1271_v13 = vsel %vm1053_vm2, %v2208_v12, 0.0 }
 0x368   : > { %1272 = vadd.xlane.f32.xlu1 %v1271_v13 }
 0x3e9   : > { %v1264_v14 = vpop.xlane.xlu0 %1263 }
 0x3ea   : > { %2209 = vrcp.f32 %v1264_v14 }
 0x3ed   : > { %v1267_v15 = vpop.xlane.xlu1 %1266 }
 0x3ee   : > { %2211 = vrcp.f32 %v1267_v15 }
 0x3f1   : > { %v1270_v16 = vpop.xlane.xlu0 %1269 }
 0x3f2   : > { %2213 = vrcp.f32 %v1270_v16 }
 0x3f4   : > { %v2210_v17 = vpop.eup %2209 }
 0x3f5   : > { %v1278_v19 = vmul.f32 %v2210_v17, %v2202_v5  ;;  %v1273_v20 = vpop.xlane.xlu1 %1272  ;;  %v1908_v17 = vld [vmem:[%s3106_s8] ss:$0 sm:$0xff] }
 0x3f6   : > { %2215 = vrcp.f32 %v1273_v20 }
 0x3f7   : > { %v1282_v21 = vpack.c.bf16 %v1278_v19, %v1278_v19 }
 0x3f8   : > { %v2212_v22 = vpop.eup %2211 }
 0x3f9   : > { %v1279_v26 = vmul.f32 %v2212_v22, %v2204_v8  ;;  %2060 = vmatmul.mubr.msk.bf16.vlgmr.msra.gmra.mrb[32].mxu0 %vm1053_vm2, %v1282_v21 }
 0x3fa   : > { %2070 = vmatpush3.bf16.msra.mxu0 %v1387_v23  ;;  %2071 = vmatprep.mubr.msk.bf16.mxu0 %vm2515_vm0, %v2514_v0 }
 0x3fb   : > { %v1283_v27 = vpack.c.bf16 %v1279_v26, %v1279_v26  ;;  %2081 = vmatprep.subr.bf16.mxu0 %v2514_v0 }
 0x3fc   : > { %v2214_v24 = vpop.eup %2213 }
 0x3fd   : > { %v1280_v31 = vmul.f32 %v2214_v24, %v2206_v10  ;;  %2066 = vmatmul.mubr.msk.bf16.vlgmr.msra.gmra.mrb[32].mxu1 %vm1053_vm2, %v1283_v27 }
 0x3fe   : > { %2076 = vmatpush3.bf16.msra.mxu1 %v1433_v30  ;;  %2077 = vmatprep.mubr.msk.bf16.mxu1 %vm2515_vm0, %v2514_v0 }
 0x3ff   : > { %v1284_v28 = vpack.c.bf16 %v1280_v31, %v1280_v31  ;;  %2087 = vmatprep.subr.bf16.mxu1 %v2514_v0 }
 0x400   : > { %v2216_v33 = vpop.eup %2215 }
 0x401   : > { %v1281_v34 = vmul.f32 %v2216_v33, %v2208_v12  ;;  %2072 = vmatmul.mubr.msk.bf16.vlgmr.msra.gmra.mrb[36].mxu0 %vm1053_vm2, %v1284_v28 }
 0x402   : > { %2082 = vmatpush3.bf16.msra.mxu0 %v1487_v32  ;;  %2083 = vmatprep.mubr.msk.bf16.mxu0 %vm2515_vm0, %v2514_v0 }
 0x403   : > { %v1285_v35 = vpack.c.bf16 %v1281_v34, %v1281_v34  ;;  %2093 = vmatprep.subr.bf16.mxu0 %v2514_v0 }
 0x405   : > { %2078 = vmatmul.mubr.msk.bf16.vlgmr.msra.gmra.mrb[36].mxu1 %vm1053_vm2, %v1285_v35 }
 0x406   : > { %2089 = vmatprep.mubr.msk.bf16.mxu1 %vm2515_vm0, %v2514_v0  ;;  %2088 = vmatpush3.bf16.msra.mxu1 %v1533_v37 }
 0x407   : > { %2099 = vmatprep.subr.bf16.mxu1 %v2514_v0 }
 0x4cc   : > { %v1331_v39 = vpop.f32.mrb[32].mxu0 }
 0x4cd   : > { %v1475_v40 = vpack.c.bf16 %v1331_v39, %v1331_v39  ;;  %v2061_v41 = vpop.f32.mrb[33].mxu0 }
 0x4ce   : > { %v1334_v43 = vpop.f32.mrb[34].mxu0 }
 0x4cf   : > { %v2062_v45 = vpop.f32.mrb[35].mxu0  ;;  %2084 = vmatmul.mubr.msk.bf16.vlgmr.msra.gmra.mrb[40].mxu0 %vm1053_vm2, %v1475_v40 }
 0x4d0   : > { %v1377_v46 = vpop.f32.mrb[32].mxu1  ;;  %2094 = vmatpush3.bf16.msra.mxu0 %v1579_v42  ;;  %2095 = vmatprep.mubr.msk.bf16.mxu0 %vm2515_vm0, %v2514_v0 }
 0x4d1   : > { %v1476_v47 = vpack.c.bf16 %v1377_v46, %v1377_v46  ;;  %v2067_v48 = vpop.f32.mrb[33].mxu1 }
 0x4d2   : > { %v1380_v50 = vpop.f32.mrb[34].mxu1 }
 0x4d3   : > { %v2068_v51 = vpop.f32.mrb[35].mxu1  ;;  %2090 = vmatmul.mubr.msk.bf16.vlgmr.msra.gmra.mrb[40].mxu1 %vm1053_vm2, %v1476_v47 }
 0x4d4   : > { %v1423_v52 = vpop.f32.mrb[36].mxu0  ;;  %2100 = vmatpush3.bf16.msra.mxu1 %v1625_v49  ;;  %2101 = vmatprep.mubr.msk.bf16.mxu1 %vm2515_vm0, %v2514_v0 }
 0x4d5   : > { %v1477_v53 = vpack.c.bf16 %v1423_v52, %v1423_v52  ;;  %v2073_v54 = vpop.f32.mrb[37].mxu0 }
 0x4d6   : > { %v1426_v55 = vpop.f32.mrb[38].mxu0 }
 0x4d7   : > { %v2074_v56 = vpop.f32.mrb[39].mxu0  ;;  %2096 = vmatmul.mubr.msk.bf16.vlgmr.msra.gmra.mrb[44].mxu0 %vm1053_vm2, %v1477_v53 }
 0x4d8   : > { %v1469_v57 = vpop.f32.mrb[36].mxu1 }
 0x4d9   : > { %v1478_v58 = vpack.c.bf16 %v1469_v57, %v1469_v57  ;;  %v2079_v59 = vpop.f32.mrb[37].mxu1 }
 0x4da   : > { %v1472_v60 = vpop.f32.mrb[38].mxu1 }
 0x4db   : > { %v2080_v61 = vpop.f32.mrb[39].mxu1  ;;  %2102 = vmatmul.mubr.msk.bf16.vlgmr.msra.gmra.mrb[44].mxu1 %vm1053_vm2, %v1478_v58 }
 0x5a2   : > { %v1523_v62 = vpop.f32.mrb[40].mxu0 }
 0x5a3   : > { %v2085_v63 = vpop.f32.mrb[41].mxu0  ;;  %v1667_v0 = vsel %vm510_vm1, %v1523_v62, 0.0 }
 0x5a4   : > { %v1526_v1 = vpop.f32.mrb[42].mxu0 }
 0x5a5   : > { %v2086_v2 = vpop.f32.mrb[43].mxu0 }
 0x5a6   : > { %v1569_v3 = vpop.f32.mrb[40].mxu1 }
 0x5a7   : > { %v1668_v4 = vsel %vm510_vm1, %v1569_v3, 0.0  ;;  %v2091_v5 = vpop.f32.mrb[41].mxu1 }
 0x5a8   : > { %v1669_v6 = vadd.f32 %v1668_v4, %v1667_v0  ;;  %v1572_v7 = vpop.f32.mrb[42].mxu1 }
 0x5a9   : > { %v2092_v8 = vpop.f32.mrb[43].mxu1 }
 0x5aa   : > { %v1615_v9 = vpop.f32.mrb[44].mxu0 }
 0x5ab   : > { %v1670_v10 = vsel %vm510_vm1, %v1615_v9, 0.0  ;;  %v2097_v11 = vpop.f32.mrb[45].mxu0 }
 0x5ac   : > { %v1671_v12 = vadd.f32 %v1670_v10, %v1669_v6  ;;  %v1618_v13 = vpop.f32.mrb[46].mxu0 }
 0x5ad   : > { %v2098_v14 = vpop.f32.mrb[47].mxu0 }
 0x5ae   : > { %v1661_v15 = vpop.f32.mrb[44].mxu1 }
 0x5af   : > { %v1672_v16 = vsel %vm510_vm1, %v1661_v15, 0.0  ;;  %v2103_v18 = vpop.f32.mrb[45].mxu1 }
 0x5b0   : > { %v1673_v19 = vadd.f32 %v1672_v16, %v1671_v12  ;;  %v1664_v20 = vpop.f32.mrb[46].mxu1 }
 0x5b1   : > { %v2104_v21 = vpop.f32.mrb[47].mxu1 }
 0x5b2   : > { %v1681_v22 = vadd.f32 %v1908_v17, %v1673_v19 }
 0x5b4   : > { %1682 = vst.msk [vmem:[%s498_s26] sm:$0xff] %vm510_vm1, %v1681_v22 }
 0x5b5   : > { %2434 = shalt.err (!%p2431_p5)
}
 0x5b6   : > { %s2435_s6 = scalar_lea.hbm %s3053_s24, 128  ;;  %s2439_s18 = scalar_lea.hbm %s3161_s16, 256 }
 0x5b7   : > { %p2436_p6 = scmp.ne.s32.totalorder %s3053_s24, %s2435_s6  ;;  %p2440_p4 = scmp.lt.u32.totalorder %s3053_s24, %s3161_s16 }
 0x5b8   : > { %p2441_p0 = scmp.lt.u32.totalorder %s2439_s18, %s2435_s6  ;;  %p2443_p7 = scmp.lt.u32.totalorder %s2435_s6, %s3053_s24 }
 0x5b9   : > { %p2437_p2 = pnand %p2436_p6, %p3162_p11 }
 0x5ba   : > { %p2442_p8 = por %p2441_p0, %p2440_p4 }
 0x5bb   : > { %p2438_p12 = pneg %p2437_p2 }
 0x5bc   : > { %p2444_p10 = por %p2443_p7, %p2442_p8 }
 0x5be   : > { %p2445_p1 = pnand %p2444_p10, %p2438_p12 }
 0x5c0   : > { %2448 = shalt.err (!%p2445_p1)
}
 0x5c1   : > { %2125 = dma.vmem_to_hbm [thread:$0]  (%p3162_p11), %s3055_s17, 128, %s3053_s24, %s1684_s20  }
 0x5c2 PF: > { %s3163_s21 = sld [smem:[#allocation21_spill]]  ;;  %s3164_s29 = sld [smem:[#allocation22_spill]] }
 0x5c3   : > { %p3166_p9 = scmp.ge.s32.totalorder %s2503_s12, 2 }
 0x5c8   : > { %s1709_s9 = sand.u32 1, %s3163_s21   ;;  %p3165_p13 = scmp.ne.s32.totalorder %s3164_s29, 0 }
 0x5c9   : > { %s1710_s14 = scalar_lea.sflag [#allocation4], %s1709_s9 }
 0x5ca   : > { %p2151_p3 = pnand %p3166_p9, %p3165_p13 }
 0x5cc   : > { %2486 = dma.done.wait (!%p2151_p3), %s1710_s14, 128  }
 0x5cd   : > { %2488 = vsyncadd (!%p2151_p3), %s1710_s14, 4294967168  ;;  %s3167_s12 = sld [smem:[#allocation23_spill]]  ;;  %s3168_s26 = sld [smem:[#allocation24_spill]] }
 0x5ce   : > { %s3169_s30 = smov %s2495_s10  ;;  %s3170_s10 = smov %s2499_s11 }
 0x5d3   : > { %p29_p5 = scmp.ge.s32.totalorder %s3167_s12, 4   ;;  %s3171_s11 = smov %s3168_s26 }
 0x5d5   :  { %31 = sbr.rel (!%p29_p5) target bundleno = 15 (0xf), region = 150 }
 0x5dc   :  { %1715 = vsyncpa [#allocation3], 1 }
 0x5dd   :  { %1717 = vsyncpa [#allocation3 + $0x1], 1 }
 0x5de   :  { %1718 = vsyncpa [#allocation6], 1 }
 0x5df   :  { %1720 = vsyncpa [#allocation6 + $0x1], 1 }
 0x5e0   :  { %1721 = vsyncpa [#allocation9], 1 }
 0x5e1   :  { %1723 = vsyncpa [#allocation9 + $0x1], 1 }
 0x5e2   :  { %1724 = vsyncpa [#allocation12], 1 }
 0x5e3   :  { %1725 = vsyncpa [#allocation4], 1 }
 0x5e4   :  { %1727 = vsyncpa [#allocation4 + $0x1], 1 }

</bundles_post_ra>
